<compile_context>
chip_gen: v5e
topology: v5e:2x2
jax: 0.10.0
libtpu: 0.0.40
codegen_flags: <defaults>
</compile_context>

<pallas_src>
import functools

import jax
import jax.numpy as jnp
from jax.experimental import pallas as pl
from jax.experimental.pallas import tpu as pltpu


def _round_up(n, m):
    return ((n + m - 1) // m) * m


def _projection_head_kernel(x_ref, w1_ref, b1_ref, w2_ref, b2_ref, o_ref, h_ref):
    # fc1: [TB, Dp] @ [Dp, Hp] -> f32 accumulate, bias-add + ReLU in f32.
    h = jnp.dot(x_ref[...], w1_ref[...], preferred_element_type=jnp.float32)
    h = jnp.maximum(h + b1_ref[...], 0.0)
    # Park the hidden activation in VMEM scratch (bounds vreg pressure,
    # lets the compiler pipeline the two matmuls cleanly).
    h_ref[...] = h
    # fc2: [TB, Hp] @ [Hp, Op] -> f32 accumulate, bias-add, cast to out dtype.
    # If weights are bf16 this is standard mixed precision (h cast once).
    y = jnp.dot(h_ref[...].astype(w2_ref.dtype), w2_ref[...],
                preferred_element_type=jnp.float32)
    o_ref[...] = (y + b2_ref[...]).astype(o_ref.dtype)


@functools.partial(jax.jit, static_argnames=("block_batch",))
def projection_head(x, w1, b1, w2, b2, *, block_batch=256):
    """Fused fc1 -> ReLU -> fc2.

    x: [B, D]; w1: [D, 2D]; b1: [2D]; w2: [2D, O]; b2: [O]  ->  [B, O]
    """
    B, D = x.shape
    H = w1.shape[1]
    O = w2.shape[1]
    dtype = x.dtype
    itemsize = jnp.dtype(dtype).itemsize

    LANE, SUBLANE = 128, 8
    Dp = _round_up(D, LANE)
    Hp = _round_up(H, LANE)
    Op = _round_up(O, LANE)

    # Batch tile: multiple of 8 sublanes, capped by block_batch (default 256,
    # MXU-friendly on v6e while still fitting the v7x VMEM budget below).
    TB = min(_round_up(B, SUBLANE), _round_up(block_batch, SUBLANE))
    Bp = _round_up(B, TB)

    # Zero-pad everything to the tiled/lane-dense shapes (exact semantics).
    xp = jnp.pad(x, ((0, Bp - B), (0, Dp - D)))
    w1p = jnp.pad(w1, ((0, Dp - D), (0, Hp - H)))
    b1p = jnp.pad(b1, (0, Hp - H)).reshape(1, Hp)
    w2p = jnp.pad(w2, ((0, Hp - H), (0, Op - O)))
    b2p = jnp.pad(b2, (0, Op - O)).reshape(1, Op)

    # VMEM budget: double-buffered x/out tiles + (conservatively 2x) resident
    # weights/biases + the f32 hidden scratch; ~25% headroom, capped at 64 MiB
    # so the same sizing is safe on v7x (64 MiB physical VMEM per TC).
    vmem_bytes = (
        2 * TB * Dp * itemsize                       # x tiles (double-buffered)
        + 2 * TB * Op * itemsize                     # out tiles (double-buffered)
        + 2 * (Dp * Hp + Hp * Op + Hp + Op) * itemsize  # resident weights/biases
        + TB * Hp * 4                                # f32 hidden scratch
    )
    vmem_limit = int(min(max(int(vmem_bytes * 1.25), 16 * 1024 * 1024),
                         64 * 1024 * 1024))

    flops = 2 * Bp * Dp * Hp + 2 * Bp * Hp * Op
    bytes_accessed = ((xp.size + w1p.size + b1p.size + w2p.size + b2p.size)
                      * itemsize + Bp * Op * itemsize)

    grid = (Bp // TB,)

    out_padded = pl.pallas_call(
        _projection_head_kernel,
        out_shape=jax.ShapeDtypeStruct((Bp, Op), dtype),
        grid_spec=pltpu.PrefetchScalarGridSpec(
            num_scalar_prefetch=0,
            grid=grid,
            in_specs=[
                pl.BlockSpec((TB, Dp), lambda i: (i, 0)),   # x: tiled over batch
                pl.BlockSpec((Dp, Hp), lambda i: (0, 0)),   # w1: resident
                pl.BlockSpec((1, Hp), lambda i: (0, 0)),    # b1: resident
                pl.BlockSpec((Hp, Op), lambda i: (0, 0)),   # w2: resident
                pl.BlockSpec((1, Op), lambda i: (0, 0)),    # b2: resident
            ],
            out_specs=pl.BlockSpec((TB, Op), lambda i: (i, 0)),
            scratch_shapes=[pltpu.VMEM((TB, Hp), jnp.float32)],
        ),
        compiler_params=pltpu.CompilerParams(
            dimension_semantics=("parallel",),   # shards batch tiles across TCs on v7x
            vmem_limit_bytes=vmem_limit,
        ),
        cost_estimate=pl.CostEstimate(
            flops=flops, transcendentals=0, bytes_accessed=bytes_accessed),
    )(xp, w1p, b1p, w2p, b2p)

    # Strip batch / output-column padding.
    return out_padded[:B, :O]


def init_params(key, input_dim, output_dim, dtype=jnp.float32):
    """Synthetic init mimicking nn.Linear defaults (weights pre-transposed)."""
    hidden = 2 * input_dim
    k1, k2, k3, k4 = jax.random.split(key, 4)
    bound1 = 1.0 / jnp.sqrt(input_dim)
    bound2 = 1.0 / jnp.sqrt(hidden)
    w1 = jax.random.uniform(k1, (input_dim, hidden), dtype, -bound1, bound1)
    b1 = jax.random.uniform(k2, (hidden,), dtype, -bound1, bound1)
    w2 = jax.random.uniform(k3, (hidden, output_dim), dtype, -bound2, bound2)
    b2 = jax.random.uniform(k4, (output_dim,), dtype, -bound2, bound2)
    return w1, b1, w2, b2


if __name__ == "__main__":
    key = jax.random.PRNGKey(0)
    batch, input_dim, output_dim = 8, 32, 16

    kx, kp = jax.random.split(key)
    x = jax.random.normal(kx, (batch, input_dim), jnp.float32)
    w1, b1, w2, b2 = init_params(kp, input_dim, output_dim)

    out = projection_head(x, w1, b1, w2, b2)
    out = jax.block_until_ready(out)

    # Pure-JAX reference check of forward semantics.
    ref = jnp.maximum(x @ w1 + b1, 0.0) @ w2 + b2
    assert out.shape == (batch, output_dim)
    assert jnp.allclose(out, ref, atol=1e-5, rtol=1e-5)

    print("KERNEL_OK")
</pallas_src>

<mosaic_0001>
module attributes {stable_mosaic.version = 11 : i64} {
  func.func @_projection_head_kernel(%arg0: i32, %arg1: memref<8x128xf32, #tpu.memory_space<vmem>>, %arg2: memref<128x128xf32, #tpu.memory_space<vmem>>, %arg3: memref<1x128xf32, #tpu.memory_space<vmem>>, %arg4: memref<128x128xf32, #tpu.memory_space<vmem>>, %arg5: memref<1x128xf32, #tpu.memory_space<vmem>>, %arg6: memref<8x128xf32, #tpu.memory_space<vmem>>, %arg7: memref<8x128xf32, #tpu.memory_space<vmem>>) attributes {dimension_semantics = [#tpu.dimension_semantics<parallel>], iteration_bounds = array<i64: 1>, scalar_prefetch = 0 : i64, scratch_operands = 1 : i64, tpu.core_type = #tpu.core_type<tc>, window_params = [{transform_indices = @transform_0, window_bounds = array<i64: 8, 128>}, {pipeline_mode = #tpu.pipeline_mode<synchronous>, transform_indices = @transform_1, window_bounds = array<i64: 128, 128>}, {pipeline_mode = #tpu.pipeline_mode<synchronous>, transform_indices = @transform_2, window_bounds = array<i64: 1, 128>}, {pipeline_mode = #tpu.pipeline_mode<synchronous>, transform_indices = @transform_3, window_bounds = array<i64: 128, 128>}, {pipeline_mode = #tpu.pipeline_mode<synchronous>, transform_indices = @transform_4, window_bounds = array<i64: 1, 128>}, {transform_indices = @transform_5, window_bounds = array<i64: 8, 128>}]} {
    %c0 = arith.constant 0 : index
    %c0_0 = arith.constant 0 : index
    %0 = vector.load %arg1[%c0, %c0_0] : memref<8x128xf32, #tpu.memory_space<vmem>>, vector<8x128xf32>
    %c0_1 = arith.constant 0 : index
    %c0_2 = arith.constant 0 : index
    %1 = vector.load %arg2[%c0_1, %c0_2] : memref<128x128xf32, #tpu.memory_space<vmem>>, vector<128x128xf32>
    %cst = arith.constant dense<0.000000e+00> : vector<8x128xf32>
    %2 = tpu.matmul %0, %1, %cst {dimension_numbers = #tpu.dot_dimension_numbers<[1], [0], [0], [1], [0, 0, 1, 1], [], []>} : vector<8x128xf32>, vector<128x128xf32>, vector<8x128xf32> -> vector<8x128xf32>
    %c0_3 = arith.constant 0 : index
    %c0_4 = arith.constant 0 : index
    %3 = vector.load %arg3[%c0_3, %c0_4] : memref<1x128xf32, #tpu.memory_space<vmem>>, vector<1x128xf32>
    %4 = vector.broadcast %3 : vector<1x128xf32> to vector<8x128xf32>
    %5 = arith.addf %2, %4 : vector<8x128xf32>
    %cst_5 = arith.constant 0.000000e+00 : f32
    %6 = vector.broadcast %cst_5 : f32 to vector<8x128xf32>
    %7 = arith.maximumf %5, %6 : vector<8x128xf32>
    %c0_6 = arith.constant 0 : index
    %c0_7 = arith.constant 0 : index
    %8 = vector.load %arg7[%c0_6, %c0_7] : memref<8x128xf32, #tpu.memory_space<vmem>>, vector<8x128xf32>
    tpu.vector_store %arg7[%c0_6, %c0_7], %7 {strides = array<i32>} : memref<8x128xf32, #tpu.memory_space<vmem>>, vector<8x128xf32>,
    %c0_8 = arith.constant 0 : index
    %c0_9 = arith.constant 0 : index
    %9 = vector.load %arg7[%c0_8, %c0_9] : memref<8x128xf32, #tpu.memory_space<vmem>>, vector<8x128xf32>
    %c0_10 = arith.constant 0 : index
    %c0_11 = arith.constant 0 : index
    %10 = vector.load %arg4[%c0_10, %c0_11] : memref<128x128xf32, #tpu.memory_space<vmem>>, vector<128x128xf32>
    %cst_12 = arith.constant dense<0.000000e+00> : vector<8x128xf32>
    %11 = tpu.matmul %9, %10, %cst_12 {dimension_numbers = #tpu.dot_dimension_numbers<[1], [0], [0], [1], [0, 0, 1, 1], [], []>} : vector<8x128xf32>, vector<128x128xf32>, vector<8x128xf32> -> vector<8x128xf32>
    %c0_13 = arith.constant 0 : index
    %c0_14 = arith.constant 0 : index
    %12 = vector.load %arg5[%c0_13, %c0_14] : memref<1x128xf32, #tpu.memory_space<vmem>>, vector<1x128xf32>
    %13 = vector.broadcast %12 : vector<1x128xf32> to vector<8x128xf32>
    %14 = arith.addf %11, %13 : vector<8x128xf32>
    %c0_15 = arith.constant 0 : index
    %c0_16 = arith.constant 0 : index
    %15 = vector.load %arg6[%c0_15, %c0_16] : memref<8x128xf32, #tpu.memory_space<vmem>>, vector<8x128xf32>
    tpu.vector_store %arg6[%c0_15, %c0_16], %14 {strides = array<i32>} : memref<8x128xf32, #tpu.memory_space<vmem>>, vector<8x128xf32>,
    return
  }
  func.func @transform_0(%arg0: i32) -> (i32, i32) {
    %c0_i32 = arith.constant 0 : i32
    %c0_i32_0 = arith.constant 0 : i32
    return %arg0, %c0_i32 : i32, i32
  }
  func.func @transform_1(%arg0: i32) -> (i32, i32) {
    %c0_i32 = arith.constant 0 : i32
    %c0_i32_0 = arith.constant 0 : i32
    %c0_i32_1 = arith.constant 0 : i32
    return %c0_i32, %c0_i32_0 : i32, i32
  }
  func.func @transform_2(%arg0: i32) -> (i32, i32) {
    %c0_i32 = arith.constant 0 : i32
    %c0_i32_0 = arith.constant 0 : i32
    %c0_i32_1 = arith.constant 0 : i32
    return %c0_i32, %c0_i32_0 : i32, i32
  }
  func.func @transform_3(%arg0: i32) -> (i32, i32) {
    %c0_i32 = arith.constant 0 : i32
    %c0_i32_0 = arith.constant 0 : i32
    %c0_i32_1 = arith.constant 0 : i32
    return %c0_i32, %c0_i32_0 : i32, i32
  }
  func.func @transform_4(%arg0: i32) -> (i32, i32) {
    %c0_i32 = arith.constant 0 : i32
    %c0_i32_0 = arith.constant 0 : i32
    %c0_i32_1 = arith.constant 0 : i32
    return %c0_i32, %c0_i32_0 : i32, i32
  }
  func.func @transform_5(%arg0: i32) -> (i32, i32) {
    %c0_i32 = arith.constant 0 : i32
    %c0_i32_0 = arith.constant 0 : i32
    return %arg0, %c0_i32 : i32, i32
  }
}

</mosaic_0001>

<bundles_post_ra>
// kernel: projection_head.1
= control target key start
LH: loop header
LB: loop body
LE: loop exit
PB: predicated region body
PF: predicated region fallthrough
CT: control target
= control target key end

     0   :  { %s290_s0 = inlined_call_operand.vmem [shape: f32[8,128], index: 0, kind: input, shape index: {}]   ;;  %s291_s1 = inlined_call_operand.vmem [shape: f32[128,128], index: 1, kind: input, shape index: {}]   ;;  %s292_s2 = inlined_call_operand.vmem [shape: f32[1,128], index: 2, kind: input, shape index: {}]   ;;  %s293_s3 = inlined_call_operand.vmem [shape: f32[128,128], index: 3, kind: input, shape index: {}]   ;;  %s294_s4 = inlined_call_operand.vmem [shape: f32[1,128], index: 4, kind: input, shape index: {}]   ;;  %s295_s5 = inlined_call_operand.hbm [shape: f32[8,128], index: 5, kind: output, shape index: {}]  }
   0x1   :  { %v37_v0 = vld [vmem:[%s291_s1 + $0x78] sm:$0xff]  ;;  %v36_v1 = vld [vmem:[%s291_s1 + $0x70] sm:$0xff]  ;;  %v35_v2 = vld [vmem:[%s291_s1 + $0x68] sm:$0xff] }
   0x2   :  { %42 = vmatpush.msra.mxu0 %v37_v0  ;;  %v34_v3 = vld [vmem:[%s291_s1 + $0x60] sm:$0xff]  ;;  %v80_v4 = vld [vmem:[%s293_s3 + $0x78] sm:$0xff]  ;;  %v79_v6 = vld [vmem:[%s293_s3 + $0x70] sm:$0xff] }
   0x3   :  { %v33_v5 = vld [vmem:[%s291_s1 + $0x58] sm:$0xff]  ;;  %85 = vmatpush.msra.mxu1 %v80_v4  ;;  %v78_v7 = vld [vmem:[%s293_s3 + $0x68] sm:$0xff]  ;;  %v32_v8 = vld [vmem:[%s291_s1 + $0x50] sm:$0xff] }
   0x4   :  { %43 = vmatpush.msra.mxu0 %v36_v1  ;;  %v77_v9 = vld [vmem:[%s293_s3 + $0x60] sm:$0xff]  ;;  %v31_v10 = vld [vmem:[%s291_s1 + $0x48] sm:$0xff]  ;;  %v76_v11 = vld [vmem:[%s293_s3 + $0x58] sm:$0xff] }
   0x5   :  { %86 = vmatpush.msra.mxu1 %v79_v6 }
   0x6   :  { %44 = vmatpush.msra.mxu0 %v35_v2 }
   0x7   :  { %87 = vmatpush.msra.mxu1 %v78_v7 }
   0x8   :  { %45 = vmatpush.msra.mxu0 %v34_v3 }
   0xa   :  { %46 = vmatpush.msra.mxu0 %v33_v5 }
   0xc   :  { %47 = vmatpush.msra.mxu0 %v32_v8 }
   0xd   :  { %10 = vsyncpa [#allocation4], 0  ;;  %v30_v12 = vld [vmem:[%s291_s1 + $0x40] sm:$0xff]  ;;  %88 = vmatpush.msra.mxu1 %v77_v9  ;;  %v75_v13 = vld [vmem:[%s293_s3 + $0x50] sm:$0xff]  ;;  %s151_s11 = smov [#allocation3]   ;;  %s113_s15 = sshll.u32 %s295_s5, 4  ;;  %s114_s15 = int_to_ptr.hbm [resolvable:$true] %s113_s15 }
   0xe   :  { %48 = vmatpush.msra.mxu0 %v31_v10  ;;  %v29_v14 = vld [vmem:[%s291_s1 + $0x38] sm:$0xff]  ;;  %v74_v15 = vld [vmem:[%s293_s3 + $0x48] sm:$0xff]  ;;  %v28_v16 = vld [vmem:[%s291_s1 + $0x30] sm:$0xff]  ;;  %s111_s12 = sshll.u32 %s151_s11, 4  ;;  %s112_s12 = int_to_ptr.vmem [resolvable:$true] %s111_s12 }
   0xf   :  { %89 = vmatpush.msra.mxu1 %v76_v11  ;;  %v73_v17 = vld [vmem:[%s293_s3 + $0x40] sm:$0xff]  ;;  %v27_v18 = vld [vmem:[%s291_s1 + $0x28] sm:$0xff]  ;;  %v72_v19 = vld [vmem:[%s293_s3 + $0x38] sm:$0xff] }
  0x10   :  { %49 = vmatpush.msra.mxu0 %v30_v12  ;;  %v26_v20 = vld [vmem:[%s291_s1 + $0x20] sm:$0xff]  ;;  %v71_v21 = vld [vmem:[%s293_s3 + $0x30] sm:$0xff]  ;;  %v25_v22 = vld [vmem:[%s291_s1 + $0x18] sm:$0xff] }
  0x11   :  { %90 = vmatpush.msra.mxu1 %v75_v13  ;;  %v70_v23 = vld [vmem:[%s293_s3 + $0x28] sm:$0xff]  ;;  %v24_v24 = vld [vmem:[%s291_s1 + $0x10] sm:$0xff]  ;;  %v69_v25 = vld [vmem:[%s293_s3 + $0x20] sm:$0xff] }
  0x12   :  { %50 = vmatpush.msra.mxu0 %v29_v14  ;;  %v23_v26 = vld [vmem:[%s291_s1 + $0x8] sm:$0xff]  ;;  %v68_v27 = vld [vmem:[%s293_s3 + $0x18] sm:$0xff]  ;;  %v22_v28 = vld [vmem:[%s291_s1] sm:$0xff] }
  0x13   :  { %91 = vmatpush.msra.mxu1 %v74_v15  ;;  %v21_v29 = vld [vmem:[%s290_s0] sm:$0xff]  ;;  %v67_v30 = vld [vmem:[%s293_s3 + $0x10] sm:$0xff]  ;;  %v66_v31 = vld [vmem:[%s293_s3 + $0x8] sm:$0xff] }
  0x14   :  { %51 = vmatpush.msra.mxu0 %v28_v16  ;;  %v65_v32 = vld [vmem:[%s293_s3] sm:$0xff] }
  0x15   :  { %92 = vmatpush.msra.mxu1 %v73_v17  ;;  %v123_v33 = vld [vmem:[%s292_s2] ss:$0 sm:$0xff] }
  0x16   :  { %52 = vmatpush.msra.mxu0 %v27_v18  ;;  %v124_v37 = vld [vmem:[%s294_s4] ss:$0 sm:$0xff] }
  0x17   :  { %93 = vmatpush.msra.mxu1 %v72_v19 }
  0x18   :  { %53 = vmatpush.msra.mxu0 %v26_v20 }
  0x19   :  { %94 = vmatpush.msra.mxu1 %v71_v21 }
  0x1a   :  { %54 = vmatpush.msra.mxu0 %v25_v22 }
  0x1b   :  { %95 = vmatpush.msra.mxu1 %v70_v23 }
  0x1c   :  { %55 = vmatpush.msra.mxu0 %v24_v24 }
  0x1d   :  { %96 = vmatpush.msra.mxu1 %v69_v25 }
  0x1e   :  { %56 = vmatpush.msra.mxu0 %v23_v26 }
  0x1f   :  { %97 = vmatpush.msra.mxu1 %v68_v27 }
  0x20   :  { %57 = vmatpush.msra.mxu0 %v22_v28 }
  0x21   :  { %58 = vmatmul.f32.vlgmr.msra.gmra.mxu0 %v21_v29  ;;  %98 = vmatpush.msra.mxu1 %v67_v30 }
  0x23   :  { %99 = vmatpush.msra.mxu1 %v66_v31 }
  0x25   :  { %100 = vmatpush.msra.mxu1 %v65_v32 }
  0x9e   :  { %v59_v34 = vpop.f32.mrf.mxu0 }
  0x9f   :  { %v60_v35 = vadd.f32 %v123_v33, %v59_v34 }
  0xa1   :  { %v62_v36 = vmax.f32 %v60_v35, 0.0 }
  0xa3   :  { %101 = vmatmul.f32.vlgmr.msra.gmra.mxu1 %v62_v36 }
 0x120   :  { %v102_v38 = vpop.f32.mrf.mxu1 }
 0x121   :  { %v103_v39 = vadd.f32 %v124_v37, %v102_v38 }
 0x123   :  { %105 = vst [vmem:[#allocation3] sm:$0xff] %v103_v39 }
 0x124   :  { %116 = dma.vmem_to_hbm [thread:$0]  %s112_s12, 128, %s114_s15, [#allocation4]  }
 0x125   :  { %149 = dma.done.wait [#allocation4], 128  }
 0x126   :  { %150 = vsyncadd [#allocation4], 4294967168 }
 0x127   :  { %121 = vsyncpa [#allocation4], 1 }

</bundles_post_ra>
